<compile_context>
chip_gen: v7x
topology: tpu7x:2x2x1
jax: 0.10.0
libtpu: 0.0.40
codegen_flags: <defaults>
</compile_context>

<pallas_src>
import jax
import jax.numpy as jnp
from jax.experimental import pallas as pl
from jax.experimental.pallas import tpu as pltpu

_POSE_D, _BETA_D, _TRANS_D = 72, 10, 3
_ROWS, _LANES = 8, 128            # native f32 (sublane, lane) vreg tile = 4 KiB
_POSE_ROW, _BETA_ROW, _TRANS_ROW = 0, 1, 2


# ---------------------------------------------------------------------------
# Pallas kernel: identity pass-through over one resident (8, 128) f32 tile.
# ---------------------------------------------------------------------------
def _passthrough_kernel(params_ref, out_ref):
    # Whole-array VMEM view: a single unmasked (8, 128) tile load + store.
    out_ref[...] = params_ref[...]


_VMEM_SPEC = pl.BlockSpec(memory_space=pltpu.MemorySpace.VMEM)


def _passthrough_pallas(packed):
    return pl.pallas_call(
        _passthrough_kernel,
        out_shape=jax.ShapeDtypeStruct((_ROWS, _LANES), packed.dtype),
        in_specs=[_VMEM_SPEC],
        out_specs=_VMEM_SPEC,
    )(packed)


# Trivial VJP so gradients flow through the pallas boundary (the module exists
# so pose/beta/trans can be optimized by gradient descent on the packed tile).
@jax.custom_vjp
def _passthrough(packed):
    return _passthrough_pallas(packed)


def _passthrough_fwd(packed):
    return _passthrough_pallas(packed), None


def _passthrough_bwd(_, g):
    return (g,)


_passthrough.defvjp(_passthrough_fwd, _passthrough_bwd)


# ---------------------------------------------------------------------------
# Packing helpers (packing happens once, at parameter construction time).
# ---------------------------------------------------------------------------
def pack_params(pose, beta, trans):
    """One-time packing of (1,72)/(1,10)/(1,3) params into one (8,128) f32 tile."""
    packed = jnp.zeros((_ROWS, _LANES), jnp.float32)
    packed = packed.at[_POSE_ROW, :_POSE_D].set(
        jnp.reshape(pose, (-1,)).astype(jnp.float32))
    packed = packed.at[_BETA_ROW, :_BETA_D].set(
        jnp.reshape(beta, (-1,)).astype(jnp.float32))
    packed = packed.at[_TRANS_ROW, :_TRANS_D].set(
        jnp.reshape(trans, (-1,)).astype(jnp.float32))
    return packed


def unpack_params(packed):
    """Static slices of the packed tile -> (pose, beta, trans) with PyTorch shapes."""
    pose = packed[_POSE_ROW:_POSE_ROW + 1, :_POSE_D]
    beta = packed[_BETA_ROW:_BETA_ROW + 1, :_BETA_D]
    trans = packed[_TRANS_ROW:_TRANS_ROW + 1, :_TRANS_D]
    return pose, beta, trans


def optimization_smpl_forward(packed):
    """Pallas equivalent of OptimizationSMPL().forward() -> (pose, beta, trans)."""
    out = _passthrough(packed)
    return unpack_params(out)


_forward_jit = jax.jit(optimization_smpl_forward)


class OptimizationSMPL:
    """JAX/Pallas port of the PyTorch OptimizationSMPL module.

    The learnable state is a single persistent (8, 128) f32 tile (`self.packed`);
    pose/beta/trans are exposed as static slices of it.
    """
    # TODO(synk): `packed` is a plain array, not a registered nn.Parameter —
    # hand it to optax / a pytree param container in a real optimization loop.

    def __init__(self, init_pose=None, init_beta=None, init_trans=None):
        pose = (init_pose if init_pose is not None
                else jnp.zeros((1, _POSE_D), jnp.float32))
        beta = (init_beta if init_beta is not None
                else jnp.zeros((1, _BETA_D), jnp.float32))
        trans = (init_trans if init_trans is not None
                 else jnp.zeros((1, _TRANS_D), jnp.float32))
        self.packed = pack_params(pose, beta, trans)

    @property
    def pose(self):
        return self.packed[_POSE_ROW:_POSE_ROW + 1, :_POSE_D]

    @property
    def beta(self):
        return self.packed[_BETA_ROW:_BETA_ROW + 1, :_BETA_D]

    @property
    def trans(self):
        return self.packed[_TRANS_ROW:_TRANS_ROW + 1, :_TRANS_D]

    def forward(self):
        return _forward_jit(self.packed)


# ---------------------------------------------------------------------------
# One fully fused optimization step (forward + loss + grad + SGD update in a
# single jit), so the forward is never a standalone dispatch.
# ---------------------------------------------------------------------------
@jax.jit
def fused_sgd_step(packed, lr):
    def loss_fn(p):
        pose, beta, trans = optimization_smpl_forward(p)
        return jnp.sum(pose) + jnp.sum(beta) + jnp.sum(trans)

    loss, grad = jax.value_and_grad(loss_fn)(packed)
    new_packed = packed - lr * grad
    return new_packed, loss, grad


if __name__ == "__main__":
    # Deterministic parameter initialization (stands in for init_pose/beta/trans).
    key = jax.random.PRNGKey(0)
    k_pose, k_beta, k_trans = jax.random.split(key, 3)
    init_pose = jax.random.normal(k_pose, (1, _POSE_D), jnp.float32)
    init_beta = jax.random.normal(k_beta, (1, _BETA_D), jnp.float32)
    init_trans = jax.random.normal(k_trans, (1, _TRANS_D), jnp.float32)

    model = OptimizationSMPL(init_pose, init_beta, init_trans)
    pose_out, beta_out, trans_out = model.forward()
    jax.block_until_ready((pose_out, beta_out, trans_out))

    # Correctness: forward() == parameters (pure identity, bit-exact).
    assert pose_out.shape == (1, _POSE_D)
    assert beta_out.shape == (1, _BETA_D)
    assert trans_out.shape == (1, _TRANS_D)
    assert jnp.array_equal(pose_out, init_pose)
    assert jnp.array_equal(beta_out, init_beta)
    assert jnp.array_equal(trans_out, init_trans)

    # Default (zero-init) path, matching the PyTorch defaults.
    zp, zb, zt = OptimizationSMPL().forward()
    jax.block_until_ready((zp, zb, zt))
    assert not jnp.any(zp) and not jnp.any(zb) and not jnp.any(zt)

    # Fused step: gradients flow through the pallas pass-through (custom_vjp).
    # d(sum(pose)+sum(beta)+sum(trans)) / d(packed) == 1 on used slots, 0 on padding.
    new_packed, loss, grad = fused_sgd_step(model.packed, jnp.float32(0.1))
    jax.block_until_ready((new_packed, loss, grad))

    expected_grad = jnp.zeros((_ROWS, _LANES), jnp.float32)
    expected_grad = expected_grad.at[_POSE_ROW, :_POSE_D].set(1.0)
    expected_grad = expected_grad.at[_BETA_ROW, :_BETA_D].set(1.0)
    expected_grad = expected_grad.at[_TRANS_ROW, :_TRANS_D].set(1.0)
    assert jnp.array_equal(grad, expected_grad)

    expected_loss = (jnp.sum(init_pose) + jnp.sum(init_beta) + jnp.sum(init_trans))
    assert jnp.allclose(loss, expected_loss, rtol=1e-6, atol=1e-6)

    # The SGD update only moves the used slots; padding stays exactly zero.
    new_pose, new_beta, new_trans = unpack_params(new_packed)
    assert jnp.allclose(new_pose, init_pose - 0.1, rtol=1e-6, atol=1e-6)
    assert jnp.allclose(new_beta, init_beta - 0.1, rtol=1e-6, atol=1e-6)
    assert jnp.allclose(new_trans, init_trans - 0.1, rtol=1e-6, atol=1e-6)
    assert not jnp.any(new_packed[_TRANS_ROW + 1:, :])

    print("KERNEL_OK")
</pallas_src>

<mosaic_0001>
module attributes {stable_mosaic.version = 11 : i64} {
  func.func @_passthrough_kernel(%arg0: memref<8x128xf32, #tpu.memory_space<vmem>>, %arg1: memref<8x128xf32, #tpu.memory_space<vmem>>) attributes {dimension_semantics = [], scalar_prefetch = 0 : i64, scratch_operands = 0 : i64, tpu.core_type = #tpu.core_type<tc>} {
    %c0 = arith.constant 0 : index
    %c0_0 = arith.constant 0 : index
    %0 = vector.load %arg0[%c0, %c0_0] : memref<8x128xf32, #tpu.memory_space<vmem>>, vector<8x128xf32>
    %c0_1 = arith.constant 0 : index
    %c0_2 = arith.constant 0 : index
    %1 = vector.load %arg1[%c0_1, %c0_2] : memref<8x128xf32, #tpu.memory_space<vmem>>, vector<8x128xf32>
    tpu.vector_store %arg1[%c0_1, %c0_2], %0 {strides = array<i32>} : memref<8x128xf32, #tpu.memory_space<vmem>>, vector<8x128xf32>,
    return
  }
}

</mosaic_0001>

<bundles_post_ra>
// kernel: optimization_smpl_forward.1
= control target key start
LH: loop header
LB: loop body
LE: loop exit
PB: predicated region body
PF: predicated region fallthrough
CT: control target
= control target key end

     0   :  { %6 = vsyncpa [#allocation3], 0  ;;  %s52_s6 = smov [#allocation2]   ;;  %s78_s0 = inlined_call_operand.hbm [shape: f32[8,128], index: 0, kind: input, shape index: {}]   ;;  %s79_s1 = inlined_call_operand.vmem [shape: f32[8,128], index: 1, kind: output, shape index: {}]  }
   0x1   :  { %s13_s7 = sshll.u32 %s52_s6, 4  ;;  %s28_s10 = scalar_lea.hbm %s78_s0, 128  ;;  %s14_s7 = int_to_ptr.vmem [resolvable:$true] %s13_s7 }
   0x2   :  { %p29_p0 = scmp.ne.s32.totalorder %s78_s0, %s28_s10  ;;  %p32_p1 = scmp.lt.u32.totalorder %s28_s10, %s78_s0 }
   0x4   :  { %p34_p2 = pnand %p32_p1, %p29_p0 }
   0x6   :  { %37 = shalt.err (!%p34_p2)
}
   0x7   :  { %s38_s15 = scalar_lea.vmem %s14_s7, 128  ;;  %p43_p4 = scmp.lt.s32.totalorder %s14_s7, %s14_s7 }
   0x8   :  { %p39_p3 = scmp.ne.s32.totalorder %s14_s7, %s38_s15  ;;  %p44_p5 = scmp.lt.s32.totalorder %s38_s15, %s38_s15 }
   0xa   :  { %p45_p6 = por %p44_p5, %p43_p4 }
   0xc   :  { %p46_p7 = pnand %p45_p6, %p39_p3 }
   0xe   :  { %49 = shalt.err (!%p46_p7)
}
   0xf   :  { %16 = dma.hbm_to_vmem [thread:$0]  %s78_s0, 128, %s14_s7, [#allocation3]  }
  0x10   :  { %50 = dma.done.wait [#allocation3], 128  }
  0x11   :  { %51 = vsyncadd [#allocation3], 4294967168  ;;  %v20_v0 = vld [vmem:[#allocation2] sm:$0xff] }
  0x12   :  { %21 = vst [vmem:[%s79_s1] sm:$0xff] %v20_v0 }
  0x13   :  { %26 = vsyncpa [#allocation3], 1 }

</bundles_post_ra>
